<compile_context>
chip_gen: v5e
topology: v5e:2x2
jax: 0.10.0
libtpu: 0.0.40
codegen_flags: <defaults>
</compile_context>

<pallas_src>
import functools

import jax
import jax.numpy as jnp
from jax import lax
from jax.experimental import pallas as pl
from jax.experimental.pallas import tpu as pltpu


def _topk_mask_kernel(x_ref, o_ref, *, k):
    """Keep the k largest entries per column (channel axis = axis 0 of the
    (C, T) tile), zero the rest.  Ties broken by lowest channel index; NaN is
    treated as the largest value (like torch.topk); already-selected channels
    are excluded by *index* (keep mask), so -inf inputs are handled correctly."""
    x = x_ref[0]                                        # (C, T)
    C = x.shape[0]

    # Order-preserving int32 key from the f32 bit pattern: monotonic in the
    # float value; NaNs map to the largest keys (torch.topk-like).
    bits = pltpu.bitcast(x.astype(jnp.float32), jnp.int32)
    key = jnp.where(bits < 0, bits ^ jnp.int32(0x7FFFFFFF), bits)

    ch = lax.broadcasted_iota(jnp.int32, key.shape, dimension=0)
    keep = jnp.zeros(key.shape, dtype=jnp.bool_)
    neg = jnp.int32(-(2 ** 31))

    # k is a small static int -> unrolled argmax-and-mask selection.
    for _ in range(k):
        avail = jnp.where(keep, neg, key)               # exclude by index
        m = jnp.max(avail, axis=0, keepdims=True)       # per-column max
        eq = jnp.logical_and(avail == m, jnp.logical_not(keep))
        cand = jnp.where(eq, ch, jnp.int32(C))
        first = jnp.min(cand, axis=0, keepdims=True)    # lowest-index tie-break
        keep = jnp.logical_or(keep, ch == first)        # exactly one new channel

    # Match torch's x * mask (so NaN/Inf * 0 behavior is preserved).
    o_ref[0] = x * keep.astype(x.dtype)


def topk_channel(x, k, *, max_hw_tile=8192, vmem_budget_bytes=32 * 1024 * 1024):
    """x: NCHW array.  Keeps the k largest values per (b, h, w) location along
    the channel axis and zeroes the rest."""
    B, C, H, W = x.shape
    assert 1 <= k <= C
    HW = H * W

    # Free, contiguous view: channels are already dim 1, so no transposes.
    xr = x.reshape(B, C, HW)

    # Spatial (lane) tile: as large as possible while in+out tiles, each
    # double-buffered (4 resident tiles of (C, tile)), fit the VMEM budget.
    itemsize = jnp.dtype(x.dtype).itemsize
    cap = vmem_budget_bytes // (4 * C * itemsize)
    cap = max(128, (cap // 128) * 128)
    tile = min(max_hw_tile, cap)
    if HW <= tile:
        tile = HW                                       # full extent: always legal
        HWp = HW
    else:
        assert tile % 128 == 0
        HWp = pl.cdiv(HW, tile) * tile
        if HWp != HW:                                   # pad spatial axis only
            xr = jnp.pad(xr, ((0, 0), (0, 0), (0, HWp - HW)))

    grid = (B, HWp // tile)

    out = pl.pallas_call(
        functools.partial(_topk_mask_kernel, k=k),
        out_shape=jax.ShapeDtypeStruct((B, C, HWp), xr.dtype),
        grid_spec=pltpu.PrefetchScalarGridSpec(
            num_scalar_prefetch=0,
            grid=grid,
            in_specs=[pl.BlockSpec((1, C, tile), lambda b, j: (b, 0, j))],
            out_specs=pl.BlockSpec((1, C, tile), lambda b, j: (b, 0, j)),
        ),
        compiler_params=pltpu.CompilerParams(
            dimension_semantics=("parallel", "parallel"),
            vmem_limit_bytes=48 * 1024 * 1024,          # safe on v5e/v6e/v7x
        ),
    )(xr)

    if HWp != HW:
        out = out[:, :, :HW]
    return out.reshape(B, C, H, W)


def _topk_channel_ref(x, k):
    """Plain-JAX reference of the torch semantics (topk along dim=1, scatter a
    0/1 mask, multiply)."""
    B, C, H, W = x.shape
    xt = jnp.moveaxis(x, 1, -1)                         # (B, H, W, C)
    _, idx = lax.top_k(xt, k)                           # (B, H, W, k)
    onehot = jax.nn.one_hot(idx, C, dtype=xt.dtype)     # (B, H, W, k, C)
    mask = jnp.minimum(jnp.sum(onehot, axis=-2), 1.0)
    return jnp.moveaxis(xt * mask, -1, 1)


if __name__ == "__main__":
    key = jax.random.PRNGKey(0)
    x = jax.random.normal(key, (2, 4, 16, 16), dtype=jnp.float32)  # NCHW
    k = 2

    y = jax.block_until_ready(topk_channel(x, k))
    y_ref = _topk_channel_ref(x, k)

    assert y.shape == x.shape and y.dtype == x.dtype
    assert jnp.array_equal(y, y_ref), "mismatch vs reference"
    print("KERNEL_OK")
</pallas_src>

<mosaic_0001>
module attributes {stable_mosaic.version = 11 : i64} {
  func.func @_topk_mask_kernel(%arg0: i32, %arg1: i32, %arg2: memref<1x4x256xf32, #tpu.memory_space<vmem>>, %arg3: memref<1x4x256xf32, #tpu.memory_space<vmem>>) attributes {dimension_semantics = [#tpu.dimension_semantics<parallel>, #tpu.dimension_semantics<parallel>], iteration_bounds = array<i64: 2, 1>, scalar_prefetch = 0 : i64, scratch_operands = 0 : i64, tpu.core_type = #tpu.core_type<tc>, window_params = [{transform_indices = @transform_0, window_bounds = array<i64: 1, 4, 256>}, {transform_indices = @transform_1, window_bounds = array<i64: 1, 4, 256>}]} {
    %c0 = arith.constant 0 : index
    %c0_0 = arith.constant 0 : index
    %c0_1 = arith.constant 0 : index
    %0 = vector.load %arg2[%c0, %c0_0, %c0_1] : memref<1x4x256xf32, #tpu.memory_space<vmem>>, vector<1x4x256xf32>
    %1 = vector.shape_cast %0 : vector<1x4x256xf32> to vector<4x256xf32>
    %2 = tpu.bitcast %1 : vector<4x256xf32> -> vector<4x256xi32>
    %c0_i32 = arith.constant 0 : i32
    %3 = vector.broadcast %c0_i32 : i32 to vector<4x256xi32>
    %4 = arith.cmpi slt, %2, %3 : vector<4x256xi32>
    %c2147483647_i32 = arith.constant 2147483647 : i32
    %5 = vector.broadcast %c2147483647_i32 : i32 to vector<4x256xi32>
    %6 = arith.xori %2, %5 : vector<4x256xi32>
    %7 = arith.select %4, %6, %2 : vector<4x256xi1>, vector<4x256xi32>
    %8 = tpu.iota {dimensions = array<i32: 0>} : vector<4x256xi32>
    %false = arith.constant false
    %9 = vector.broadcast %false : i1 to vector<4x256xi1>
    %c-2147483648_i32 = arith.constant -2147483648 : i32
    %10 = vector.broadcast %c-2147483648_i32 : i32 to vector<4x256xi32>
    %11 = arith.select %9, %10, %7 : vector<4x256xi1>, vector<4x256xi32>
    %cst = arith.constant dense<-2147483648> : vector<256xi32>
    %12 = vector.multi_reduction <maxsi>, %11, %cst [0] : vector<4x256xi32> to vector<256xi32>
    %13 = vector.shape_cast %12 : vector<256xi32> to vector<1x256xi32>
    %14 = vector.broadcast %13 : vector<1x256xi32> to vector<4x256xi32>
    %15 = arith.cmpi eq, %11, %14 : vector<4x256xi32>
    %cst_2 = arith.constant dense<true> : vector<4x256xi1>
    %16 = arith.xori %9, %cst_2 : vector<4x256xi1>
    %17 = arith.andi %15, %16 : vector<4x256xi1>
    %c4_i32 = arith.constant 4 : i32
    %18 = vector.broadcast %c4_i32 : i32 to vector<4x256xi32>
    %19 = arith.select %17, %8, %18 : vector<4x256xi1>, vector<4x256xi32>
    %cst_3 = arith.constant dense<2147483647> : vector<256xi32>
    %20 = vector.multi_reduction <minsi>, %19, %cst_3 [0] : vector<4x256xi32> to vector<256xi32>
    %21 = vector.shape_cast %20 : vector<256xi32> to vector<1x256xi32>
    %22 = vector.broadcast %21 : vector<1x256xi32> to vector<4x256xi32>
    %23 = arith.cmpi eq, %8, %22 : vector<4x256xi32>
    %24 = arith.ori %9, %23 : vector<4x256xi1>
    %c-2147483648_i32_4 = arith.constant -2147483648 : i32
    %25 = vector.broadcast %c-2147483648_i32_4 : i32 to vector<4x256xi32>
    %26 = arith.select %24, %25, %7 : vector<4x256xi1>, vector<4x256xi32>
    %cst_5 = arith.constant dense<-2147483648> : vector<256xi32>
    %27 = vector.multi_reduction <maxsi>, %26, %cst_5 [0] : vector<4x256xi32> to vector<256xi32>
    %28 = vector.shape_cast %27 : vector<256xi32> to vector<1x256xi32>
    %29 = vector.broadcast %28 : vector<1x256xi32> to vector<4x256xi32>
    %30 = arith.cmpi eq, %26, %29 : vector<4x256xi32>
    %cst_6 = arith.constant dense<true> : vector<4x256xi1>
    %31 = arith.xori %24, %cst_6 : vector<4x256xi1>
    %32 = arith.andi %30, %31 : vector<4x256xi1>
    %c4_i32_7 = arith.constant 4 : i32
    %33 = vector.broadcast %c4_i32_7 : i32 to vector<4x256xi32>
    %34 = arith.select %32, %8, %33 : vector<4x256xi1>, vector<4x256xi32>
    %cst_8 = arith.constant dense<2147483647> : vector<256xi32>
    %35 = vector.multi_reduction <minsi>, %34, %cst_8 [0] : vector<4x256xi32> to vector<256xi32>
    %36 = vector.shape_cast %35 : vector<256xi32> to vector<1x256xi32>
    %37 = vector.broadcast %36 : vector<1x256xi32> to vector<4x256xi32>
    %38 = arith.cmpi eq, %8, %37 : vector<4x256xi32>
    %39 = arith.ori %24, %38 : vector<4x256xi1>
    %40 = arith.extui %39 : vector<4x256xi1> to vector<4x256xi32>
    %41 = arith.sitofp %40 : vector<4x256xi32> to vector<4x256xf32>
    %42 = arith.mulf %1, %41 : vector<4x256xf32>
    %c0_9 = arith.constant 0 : index
    %c0_10 = arith.constant 0 : index
    %c0_11 = arith.constant 0 : index
    %43 = vector.load %arg3[%c0_9, %c0_10, %c0_11] : memref<1x4x256xf32, #tpu.memory_space<vmem>>, vector<1x4x256xf32>
    %44 = vector.shape_cast %43 : vector<1x4x256xf32> to vector<4x256xf32>
    %45 = vector.shape_cast %42 : vector<4x256xf32> to vector<1x4x256xf32>
    tpu.vector_store %arg3[%c0_9, %c0_10, %c0_11], %45 {strides = array<i32>} : memref<1x4x256xf32, #tpu.memory_space<vmem>>, vector<1x4x256xf32>,
    return
  }
  func.func @transform_0(%arg0: i32, %arg1: i32) -> (i32, i32, i32) {
    %c0_i32 = arith.constant 0 : i32
    %c0_i32_0 = arith.constant 0 : i32
    return %arg0, %c0_i32, %arg1 : i32, i32, i32
  }
  func.func @transform_1(%arg0: i32, %arg1: i32) -> (i32, i32, i32) {
    %c0_i32 = arith.constant 0 : i32
    %c0_i32_0 = arith.constant 0 : i32
    return %arg0, %c0_i32, %arg1 : i32, i32, i32
  }
}

</mosaic_0001>

<bundles_post_ra>
// kernel: tpu_custom_call.1
= control target key start
LH: loop header
LB: loop body
LE: loop exit
PB: predicated region body
PF: predicated region fallthrough
CT: control target
= control target key end

     0   :  { %6 = vsyncpa [#allocation3], 0  ;;  %s751_s0 = inlined_call_operand.hbm [shape: f32[2,4,256], index: 0, kind: input, shape index: {}]   ;;  %s752_s1 = inlined_call_operand.hbm [shape: f32[2,4,256], index: 1, kind: output, shape index: {}]  }
   0x1   :  { %8 = vsyncpa [#allocation3 + $0x1], 0 }
   0x2   :  { %9 = vsyncpa [#allocation4], 0 }
   0x3   :  { %11 = vsyncpa [#allocation4 + $0x1], 0  ;;  %s592_s6 = smov 0   ;;  %s594_s7 = smov 0  }
   0x4   :  { %s596_s8 = smov 0   ;;  %s598_s9 = smov 0  }
   0x5   :  { %s600_s10 = smov 0   ;;  %s602_s11 = smov 0  }
   0x6 LB: > { %s383_s12 = sadd.s32 4294967295, %s578_s11   ;;  %s384_s13 = sadd.s32 4294967294, %s578_s11   ;;  %s578_s11 = sphi %s602_s11, %s17_s11   ;;  %s574_s10 = sphi %s600_s10, %s761_s10   ;;  %s570_s9 = sphi %s598_s9, %s760_s9   ;;  %s566_s8 = sphi %s596_s8, %s759_s8   ;;  %s562_s7 = sphi %s594_s7, %s758_s7   ;;  %s558_s6 = sphi %s592_s6, %s757_s6  }
   0x7   : > { %s29_s14 = sadd.s32 1, %s574_s10  ;;  %s38_s15 = sadd.s32 1, %s566_s8 }
   0x8   : > { %p31_p0 = scmp.ge.s32.totalorder %s29_s14, 2  ;;  %p45_p1 = scmp.ne.s32.totalorder %s566_s8, %s562_s7 }
   0x9   : > { %p46_p2 = scmp.eq.s32.totalorder %s578_s11, 0  ;;  %p51_p3 = scmp.ne.s32.totalorder %s562_s7, %s558_s6 }
   0xa   : > { %s763_s14 = smov (%p31_p0, %s29_s14), 0  ;;  %p52_p5 = scmp.eq.s32.totalorder %s383_s12, 0 }
   0xb   : > { %p633_p4 = por %p46_p2, %p45_p1  ;;  %s33_s17 = ssub.s32 %s574_s10, %s763_s14 }
   0xc   : > { %p77_p6 = scmp.eq.s32.totalorder %s383_s12, 1  ;;  %p36_p7 = scmp.eq.s32.totalorder %s33_s17, 0 }
   0xd   : > { %p639_p8 = por %p52_p5, %p51_p3  ;;  %p83_p10 = scmp.eq.s32.totalorder %s384_s13, 1 }
   0xe   : > { %p643_p9 = por %p77_p6, %p45_p1  ;;  %p386_p12 = scmp.ge.s32.totalorder %s578_s11, 2 }
   0xf   : > { %s648_s20 = scalar_select %p36_p7, %s566_s8, %s38_s15  }
  0x10   : > { %p650_p11 = por %p83_p10, %p51_p3  ;;  %p414_p13 = scmp.lt.s32.totalorder %s578_s11, 2 }
  0x11   : > { %s103_s22 = sand.u32 1, %s566_s8   ;;  %s400_s24 = sshll.u32 %s574_s10, 3 }
  0x12   : > { %s387_s23 = sshll.u32 %s103_s22, 3  ;;  %s114_s27 = scalar_lea.hbm %s751_s0, %s400_s24 }
  0x13   : > { %s107_s28 = scalar_lea.vmem [#allocation2], %s387_s23  ;;  %s116_s30 = sshll.u32 %s114_s27, 4  ;;  %s117_s30 = int_to_ptr.hbm [resolvable:$true] %s116_s30 }
  0x14   : > { %s118_s29 = sshll.u32 %s107_s28, 4  ;;  %p407_p0 = pnand %p414_p13, %p633_p4  ;;  %s119_s29 = int_to_ptr.vmem [resolvable:$true] %s118_s29 }
  0x15   : > { %p390_p1 = scmp.ge.s32.totalorder %s578_s11, 1  ;;  %p123_p2 = scmp.lt.s32.totalorder %s578_s11, 3 }
  0x16   : > { %s104_s2 = scalar_lea.sflag [#allocation3], %s103_s22 }
  0x17   : > { %409 = dma.hbm_to_vmem [thread:$0]  (!%p407_p0), %s117_s30, 128, %s119_s29, %s104_s2  }
  0x18   : > { %p124_p3 = pnand %p390_p1, %p123_p2 }
  0x19   : > { %s666_s3 = sand.u32 (!%p124_p3), 1, %s562_s7  }
  0x1a   : > { %127 = sbr.rel (%p124_p3) target bundleno = 115 (0x73), region = 24  ;;  %s391_s4 = sshll.u32 (!%p124_p3), %s666_s3, 3 }
  0x1b   : > { %s130_s5 = scalar_lea.sflag (!%p124_p3), [#allocation3], %s666_s3  ;;  %s133_s12 = scalar_lea.vmem (!%p124_p3), [#allocation2], %s391_s4 }
  0x1f   : > { %549 = dma.done.wait (%p639_p8), %s130_s5, 128  }
  0x20   : > { %551 = vsyncadd (%p639_p8), %s130_s5, 4294967168  ;;  %v676_v0 = vld [vmem:[%s133_s12] sm:$0xff]  ;;  %vm168_vm0 = vcmask 1043456   ;;  %v166_v15 = vlaneseq  ;;  %s401_s13 = sshll.u32 %s570_s9, 3  ;;  %s152_s9 = scalar_lea.vmem [#allocation5], %s391_s4 }
  0x21   : > { %157 = vst [vmem:[#allocation1] ss:$2 sm:$0xff] %v676_v0  ;;  %s294_s17 = scalar_lea.hbm %s752_s1, %s401_s13  ;;  %s296_s18 = sshll.u32 %s152_s9, 4  ;;  %s297_s18 = int_to_ptr.vmem [resolvable:$true] %s296_s18 }
  0x22   : > { %v681_v20 = vshrl.u32 %v166_v15, 7  ;;  %s298_s22 = sshll.u32 %s294_s17, 4  ;;  %s281_s23 = scalar_lea.sflag [#allocation4], %s666_s3  ;;  %s299_s22 = int_to_ptr.hbm [resolvable:$true] %s298_s22 }
  0x23   : > { %s510_s24 = sshra.s32 %s299_s22, 4  ;;  %s516_s28 = scalar_lea.hbm %s752_s1, 16  ;;  %s511_s24 = int_to_ptr.hbm [resolvable:$true] %s510_s24 }
  0x24   : > { %s512_s25 = scalar_lea.hbm %s511_s24, 8  ;;  %p517_p7 = scmp.lt.s32.totalorder %s511_s24, %s752_s1 }
  0x25   : > { %p513_p4 = scmp.ne.s32.totalorder %s511_s24, %s512_s25  ;;  %p518_p8 = scmp.lt.s32.totalorder %s516_s28, %s512_s25 }
  0x27   : > { %p514_p5 = pnand %p513_p4, %p643_p9  ;;  %p519_p10 = por %p518_p8, %p517_p7 }
  0x28   : > { %v158_v1 = vld.sshfl [vmem:[#allocation1] sm:$0xff pattern:$0x75316420]  ;;  %v159_v2 = vld.sshfl [vmem:[#allocation1 + $0x8] sm:$0xff pattern:$0x75316420] }
  0x29   : > { %vm160_vm1 = vcmp.lt.s32.totalorder %v158_v1, 0  ;;  %vm161_vm2 = vcmp.lt.s32.totalorder %v159_v2, 0  ;;  %v162_v3 = vxor.u32 2147483647, %v158_v1  ;;  %v163_v4 = vxor.u32 2147483647, %v159_v2  ;;  %p515_p6 = pneg %p514_p5 }
  0x2b   : > { %v164_v5 = vsel %vm160_vm1, %v162_v3, %v158_v1  ;;  %v165_v6 = vsel %vm161_vm2, %v163_v4, %v159_v2  ;;  %p520_p13 = pnand %p519_p10, %p515_p6 }
  0x2c   : > { %v169_v7 = vsel %vm168_vm0, %v164_v5, 2147483648  ;;  %v179_v8 = vsel %vm168_vm0, %v165_v6, 2147483648 }
  0x2d   : > { %v170_v9 = vrot.slane %v169_v7, 4  ;;  %v180_v10 = vrot.slane %v179_v8, 4 }
  0x2f   : > { %vm171_vm3 = vcmp.gt.s32.totalorder %v169_v7, %v170_v9  ;;  %vm181_vm4 = vcmp.gt.s32.totalorder %v179_v8, %v180_v10 }
  0x30   : > { %v172_v11 = vsel %vm171_vm3, %v169_v7, %v170_v9  ;;  %v182_v12 = vsel %vm181_vm4, %v179_v8, %v180_v10  ;;  %v581_v8 = vmov 0.0  }
  0x31   : > { %v173_v13 = vrot.slane %v172_v11, 2  ;;  %v183_v14 = vrot.slane %v182_v12, 2 }
  0x33   : > { %vm174_vm5 = vcmp.gt.s32.totalorder %v172_v11, %v173_v13  ;;  %vm184_vm6 = vcmp.gt.s32.totalorder %v182_v12, %v183_v14 }
  0x34   : > { %v175_v16 = vsel %vm174_vm5, %v172_v11, %v173_v13  ;;  %v185_v17 = vsel %vm184_vm6, %v182_v12, %v183_v14 }
  0x35   : > { %v176_v18 = vrot.slane %v175_v16, 1  ;;  %v186_v19 = vrot.slane %v185_v17, 1 }
  0x37   : > { %vm177_vm7 = vcmp.gt.s32.totalorder %v175_v16, %v176_v18  ;;  %vm187_vm8 = vcmp.gt.s32.totalorder %v185_v17, %v186_v19 }
  0x38   : > { %v178_v21 = vsel %vm177_vm7, %v175_v16, %v176_v18  ;;  %v188_v22 = vsel %vm187_vm8, %v185_v17, %v186_v19 }
  0x39   : > { %vm189_vm9 = vcmp.eq.s32.totalorder %v164_v5, %v178_v21  ;;  %vm190_vm10 = vcmp.eq.s32.totalorder %v165_v6, %v188_v22 }
  0x3a   : > { %v191_v23 = vsel %vm189_vm9, %v681_v20, 4  ;;  %v192_v24 = vsel %vm190_vm10, %v681_v20, 4  ;;  %vm580_vm10 = vmmov 1  }
  0x3b   : > { %v193_v25 = vsel %vm168_vm0, %v191_v23, 2147483647  ;;  %v203_v26 = vsel %vm168_vm0, %v192_v24, 2147483647 }
  0x3c   : > { %v194_v27 = vrot.slane %v193_v25, 4  ;;  %v204_v28 = vrot.slane %v203_v26, 4 }
  0x3e   : > { %vm195_vm11 = vcmp.lt.s32.totalorder %v193_v25, %v194_v27  ;;  %vm205_vm12 = vcmp.lt.s32.totalorder %v203_v26, %v204_v28 }
  0x3f   : > { %v196_v29 = vsel %vm195_vm11, %v193_v25, %v194_v27  ;;  %v206_v30 = vsel %vm205_vm12, %v203_v26, %v204_v28 }
  0x40   : > { %v197_v31 = vrot.slane %v196_v29, 2  ;;  %v207_v32 = vrot.slane %v206_v30, 2 }
  0x42   : > { %vm198_vm13 = vcmp.lt.s32.totalorder %v196_v29, %v197_v31  ;;  %vm208_vm14 = vcmp.lt.s32.totalorder %v206_v30, %v207_v32 }
  0x43   : > { %v199_v33 = vsel %vm198_vm13, %v196_v29, %v197_v31  ;;  %v209_v34 = vsel %vm208_vm14, %v206_v30, %v207_v32 }
  0x44   : > { %v200_v35 = vrot.slane %v199_v33, 1  ;;  %v210_v36 = vrot.slane %v209_v34, 1 }
  0x46   : > { %vm201_vm15 = vcmp.lt.s32.totalorder %v199_v33, %v200_v35  ;;  %vm211_vm1 = vcmp.lt.s32.totalorder %v209_v34, %v210_v36 }
  0x47   : > { %v202_v37 = vsel %vm201_vm15, %v199_v33, %v200_v35  ;;  %v212_v38 = vsel %vm211_vm1, %v209_v34, %v210_v36 }
  0x48   : > { %vm213_vm2 = vcmp.eq.s32.totalorder %v681_v20, %v202_v37  ;;  %vm214_vm3 = vcmp.eq.s32.totalorder %v681_v20, %v212_v38 }
  0x49   : > { %v215_v39 = vsel %vm213_vm2, 2147483648, %v164_v5  ;;  %v216_v40 = vsel %vm214_vm3, 2147483648, %v165_v6  ;;  %vm239_vm11 = vmxor %vm213_vm2, %vm580_vm10 }
  0x4a   : > { %v217_v41 = vsel %vm168_vm0, %v215_v39, 2147483648  ;;  %v227_v42 = vsel %vm168_vm0, %v216_v40, 2147483648  ;;  %vm240_vm14 = vmxor %vm214_vm3, %vm580_vm10 }
  0x4b   : > { %v218_v43 = vrot.slane %v217_v41, 4  ;;  %v228_v44 = vrot.slane %v227_v42, 4 }
  0x4d   : > { %vm219_vm4 = vcmp.gt.s32.totalorder %v217_v41, %v218_v43  ;;  %vm229_vm5 = vcmp.gt.s32.totalorder %v227_v42, %v228_v44 }
  0x4e   : > { %v220_v45 = vsel %vm219_vm4, %v217_v41, %v218_v43  ;;  %v230_v46 = vsel %vm229_vm5, %v227_v42, %v228_v44 }
  0x4f   : > { %v221_v47 = vrot.slane %v220_v45, 2  ;;  %v231_v48 = vrot.slane %v230_v46, 2 }
  0x51   : > { %vm222_vm6 = vcmp.gt.s32.totalorder %v220_v45, %v221_v47  ;;  %vm232_vm7 = vcmp.gt.s32.totalorder %v230_v46, %v231_v48 }
  0x52   : > { %v223_v49 = vsel %vm222_vm6, %v220_v45, %v221_v47  ;;  %v233_v50 = vsel %vm232_vm7, %v230_v46, %v231_v48 }
  0x53   : > { %v224_v51 = vrot.slane %v223_v49, 1  ;;  %v234_v52 = vrot.slane %v233_v50, 1 }
  0x55   : > { %vm225_vm8 = vcmp.gt.s32.totalorder %v223_v49, %v224_v51  ;;  %vm235_vm9 = vcmp.gt.s32.totalorder %v233_v50, %v234_v52 }
  0x56   : > { %v226_v53 = vsel %vm225_vm8, %v223_v49, %v224_v51  ;;  %v236_v54 = vsel %vm235_vm9, %v233_v50, %v234_v52 }
  0x57   : > { %vm237_vm12 = vcmp.eq.s32.totalorder %v215_v39, %v226_v53  ;;  %vm238_vm13 = vcmp.eq.s32.totalorder %v216_v40, %v236_v54 }
  0x58   : > { %vm241_vm15 = vmand %vm237_vm12, %vm239_vm11 }
  0x59   : > { %vm242_vm1 = vmand %vm238_vm13, %vm240_vm14  ;;  %v243_v55 = vsel %vm241_vm15, %v681_v20, 4 }
  0x5a   : > { %v244_v56 = vsel %vm242_vm1, %v681_v20, 4  ;;  %v245_v57 = vsel %vm168_vm0, %v243_v55, 2147483647 }
  0x5b   : > { %v246_v58 = vrot.slane %v245_v57, 4  ;;  %v255_v59 = vsel %vm168_vm0, %v244_v56, 2147483647 }
  0x5c   : > { %v256_v60 = vrot.slane %v255_v59, 4 }
  0x5d   : > { %vm247_vm4 = vcmp.lt.s32.totalorder %v245_v57, %v246_v58 }
  0x5e   : > { %v248_v61 = vsel %vm247_vm4, %v245_v57, %v246_v58  ;;  %vm257_vm5 = vcmp.lt.s32.totalorder %v255_v59, %v256_v60 }
  0x5f   : > { %v249_v62 = vrot.slane %v248_v61, 2  ;;  %v258_v63 = vsel %vm257_vm5, %v255_v59, %v256_v60 }
  0x60   : > { %v259_v1 = vrot.slane %v258_v63, 2 }
  0x61   : > { %vm250_vm6 = vcmp.lt.s32.totalorder %v248_v61, %v249_v62 }
  0x62   : > { %v251_v2 = vsel %vm250_vm6, %v248_v61, %v249_v62  ;;  %vm260_vm7 = vcmp.lt.s32.totalorder %v258_v63, %v259_v1 }
  0x63   : > { %v252_v3 = vrot.slane %v251_v2, 1  ;;  %v261_v4 = vsel %vm260_vm7, %v258_v63, %v259_v1 }
  0x64   : > { %v262_v5 = vrot.slane %v261_v4, 1 }
  0x65   : > { %vm253_vm8 = vcmp.lt.s32.totalorder %v251_v2, %v252_v3 }
  0x66   : > { %v254_v6 = vsel %vm253_vm8, %v251_v2, %v252_v3  ;;  %vm263_vm9 = vcmp.lt.s32.totalorder %v261_v4, %v262_v5 }
  0x67   : > { %v264_v7 = vsel %vm263_vm9, %v261_v4, %v262_v5  ;;  %vm265_vm10 = vcmp.eq.s32.totalorder %v681_v20, %v254_v6 }
  0x68   : > { %vm266_vm11 = vcmp.eq.s32.totalorder %v681_v20, %v264_v7  ;;  %vm267_vm12 = vmor %vm213_vm2, %vm265_vm10 }
  0x69   : > { %vm268_vm13 = vmor %vm214_vm3, %vm266_vm11  ;;  %v393_v11 = vsel %vm267_vm12, 1.0, %v581_v8 }
  0x6a   : > { %v394_v9 = vsel %vm268_vm13, 1.0, %v581_v8 }
  0x6b   : > { %v275_v10 = vrot.slane %v394_v9, 4 }
  0x6d   : > { %v276_v12 = vsel %vm168_vm0, %v393_v11, %v275_v10 }
  0x6e   : > { %v278_v13 = vmul.f32 %v276_v12, %v676_v0 }
  0x70   : > { %279 = vst [vmem:[%s152_s9] sm:$0xff] %v278_v13 }
  0x71   : > { %523 = shalt.err (!%p520_p13)
}
  0x72   : > { %404 = dma.vmem_to_hbm [thread:$0]  (%p643_p9), %s297_s18, 128, %s299_s22, %s281_s23  }
  0x73 PF: > { %s310_s2 = sand.u32 1, %s558_s6   ;;  %p411_p0 = pnand %p386_p12, %p650_p11 }
  0x74   : > { %s311_s3 = scalar_lea.sflag [#allocation4], %s310_s2 }
  0x75   : > { %p412_p1 = pneg %p411_p0 }
  0x77   : > { %553 = dma.done.wait (%p412_p1), %s311_s3, 128  }
  0x78   : > { %555 = vsyncadd (%p412_p1), %s311_s3, 4294967168  ;;  %s17_s11 = sadd.s32 1, %s578_s11   ;;  %s757_s6 = smov %s562_s7 }
  0x79   : > { %p14_p2 = scmp.ge.s32.totalorder %s17_s11, 4   ;;  %s758_s7 = smov %s566_s8 }
  0x7a   : > { %s759_s8 = smov %s648_s20  ;;  %s760_s9 = smov %s574_s10 }
  0x7b   : > { %s761_s10 = smov %s763_s14  ;;  %16 = sbr.rel (!%p14_p2) target bundleno = 6 (0x6), region = 69 }
  0x80   :  { %317 = vsyncpa [#allocation3], 1 }
  0x81   :  { %319 = vsyncpa [#allocation3 + $0x1], 1 }
  0x82   :  { %320 = vsyncpa [#allocation4], 1 }
  0x83   :  { %322 = vsyncpa [#allocation4 + $0x1], 1 }

</bundles_post_ra>
